<compile_context>
chip_gen: v7x
topology: tpu7x:2x2x1
jax: 0.10.0
libtpu: 0.0.40
codegen_flags: <defaults>
</compile_context>

<pallas_src>
import functools

import jax
import jax.numpy as jnp
from jax import lax
from jax.experimental import pallas as pl
from jax.experimental.pallas import tpu as pltpu


# --------------------------------------------------------------------------- #
# Bilinear resize weights (separable matmul formulation)
# --------------------------------------------------------------------------- #
def _bilinear_matrix(in_size: int, out_size: int) -> jnp.ndarray:
    """Row-resampling matrix for bilinear interpolation, align_corners=False."""
    # TODO(synk): torchvision.transforms.Resize may apply an antialias prefilter
    # when downscaling; that prefilter is not reproduced here.
    if in_size == out_size:
        return jnp.eye(out_size, dtype=jnp.float32)
    scale = in_size / out_size
    o = jnp.arange(out_size, dtype=jnp.float32)
    src = jnp.clip((o + 0.5) * scale - 0.5, 0.0, float(in_size - 1))
    lo = jnp.floor(src).astype(jnp.int32)
    hi = jnp.minimum(lo + 1, in_size - 1)
    frac = src - lo.astype(jnp.float32)
    rows = jnp.arange(out_size)
    w = jnp.zeros((out_size, in_size), jnp.float32)
    w = w.at[rows, lo].add(1.0 - frac)
    w = w.at[rows, hi].add(frac)
    return w


# --------------------------------------------------------------------------- #
# 1. input_resizer: both samples, row-chunked reduction over the source rows
# --------------------------------------------------------------------------- #
def _pair_resize_kernel(xb_ref, xa_ref, wh_ref, wwt_ref, o_ref, acc_ref,
                        *, c, hi, wi, tk, mask_rows):
    """Per grid step (batch i, row-chunk k):
         acc[s] += Wh[:, k-chunk] @ (x_s[k-chunk rows] @ Wwt)   for s in {before, after}
    W-resize first (large Wi contracted against the already-reduced Wo), then
    the H-resize contribution of this chunk is accumulated in f32."""
    k = pl.program_id(1)
    nk = pl.num_programs(1)

    @pl.when(k == 0)
    def _():
        acc_ref[...] = jnp.zeros_like(acc_ref)

    wwt = wwt_ref[...]                       # (Wi, Wo) compute dtype
    whk = wh_ref[...]                        # (Ho, tk) compute dtype
    cdt = wwt.dtype

    if mask_rows:                            # last chunk may be partial
        valid = hi - k * tk
        ridx = lax.broadcasted_iota(jnp.int32, (tk, wi), 0)
        rmask = ridx < valid

    for s, xr in enumerate((xb_ref, xa_ref)):
        xc = xr[0].astype(cdt)               # (C, tk, Wi)
        if mask_rows:
            xc = jnp.where(rmask, xc, jnp.zeros_like(xc))
        # W-resize: all channels fused into one MXU dot.
        t = jnp.dot(xc.reshape(c * tk, wi), wwt,
                    preferred_element_type=jnp.float32)      # (C*tk, Wo)
        t = t.reshape(c, tk, -1).astype(cdt)
        # H-resize contribution of this row chunk.
        for ci in range(c):
            acc_ref[s, ci] += jnp.dot(whk, t[ci],
                                      preferred_element_type=jnp.float32)

    @pl.when(k == nk - 1)
    def _():
        o_ref[0] = acc_ref[...].astype(o_ref.dtype)


def resize_pair(before, after, out_hw, *, compute_dtype=jnp.bfloat16,
                out_dtype=jnp.bfloat16, row_chunk=128):
    """(N,C,Hi,Wi) x2 -> (N, 2, C, Ho, Wo). Separable bilinear resize on the MXU."""
    # TODO(synk): before/after with different original sizes would need two calls.
    assert before.shape == after.shape, "before/after must share a shape"
    n, c, hi, wi = before.shape
    ho, wo = out_hw

    if hi <= 256:
        tk, nk = hi, 1                       # single chunk, full rows
    else:
        tk = row_chunk                       # multiple of 128 (BlockSpec lane rule)
        nk = pl.cdiv(hi, tk)
    wh = _bilinear_matrix(hi, ho)            # (Ho, Hi)
    if nk * tk > hi:                         # zero-pad so every Wh block is exact
        wh = jnp.pad(wh, ((0, 0), (0, nk * tk - hi)))
    wh = wh.astype(compute_dtype)
    wwt = _bilinear_matrix(wi, wo).T.astype(compute_dtype)   # (Wi, Wo)
    mask_rows = (nk * tk) != hi

    kernel = functools.partial(_pair_resize_kernel, c=c, hi=hi, wi=wi, tk=tk,
                               mask_rows=mask_rows)
    return pl.pallas_call(
        kernel,
        out_shape=jax.ShapeDtypeStruct((n, 2, c, ho, wo), out_dtype),
        grid_spec=pltpu.PrefetchScalarGridSpec(
            num_scalar_prefetch=0,
            grid=(n, nk),
            in_specs=[
                pl.BlockSpec((1, c, tk, wi), lambda i, k: (i, 0, k, 0)),
                pl.BlockSpec((1, c, tk, wi), lambda i, k: (i, 0, k, 0)),
                pl.BlockSpec((ho, tk), lambda i, k: (0, k)),
                pl.BlockSpec((wi, wo), lambda i, k: (0, 0)),      # resident
            ],
            out_specs=pl.BlockSpec((1, 2, c, ho, wo),
                                   lambda i, k: (i, 0, 0, 0, 0)),
            scratch_shapes=[pltpu.VMEM((2, c, ho, wo), jnp.float32)],
        ),
        compiler_params=pltpu.CompilerParams(
            dimension_semantics=("parallel", "arbitrary"),
            vmem_limit_bytes=40 * 1024 * 1024),
    )(before, after, wh, wwt)


# --------------------------------------------------------------------------- #
# 2. Stand-in segmentation net + sigmoid>0.5 threshold (one image per grid step)
# --------------------------------------------------------------------------- #
def _seg_kernel(x_ref, w1_ref, b1_ref, w2_ref, b2_ref, o_ref, hid_ref,
                *, c0, c1, h, w):
    """conv3x3(c0->c1, zero-pad 1) + bias + ReLU -> 1x1(c1->1) + bias, then z>0.

    x_ref  : (1, 1, c0, h, w) bf16 block (one image of the before/after pair)
    w1_ref : (c1, 9*c0) f32 SMEM, flat tap index = i*9 + ky*3 + kx
    b1/w2  : (c1,) f32 SMEM ;  b2 : (1,) f32 SMEM
    o_ref  : (1, 1, h, w) bf16 thresholded prediction in {0, 1}
    hid_ref: (c1, h, w) f32 VMEM accumulator (direct VPU conv, no im2col)
    """
    x = x_ref[0, 0]                                        # (c0, h, w) bf16
    cidx = lax.broadcasted_iota(jnp.int32, (1, h, w), 2)
    ridx = lax.broadcasted_iota(jnp.int32, (1, h, w), 1)
    zero = jnp.zeros_like(x)

    # Column-shifted copies (kx=0,1,2 <=> source col c-1, c, c+1), built once and
    # reused across all row taps and output channels.  Rolls run on the XLU; the
    # wrapped border column is zeroed (= the conv's zero padding).
    x_cm = jnp.where(cidx >= 1, pltpu.roll(x, shift=1, axis=2), zero)
    x_cp = jnp.where(cidx <= w - 2, pltpu.roll(x, shift=w - 1, axis=2), zero)
    col_shifted = (x_cm, x, x_cp)

    tap = 0
    for ky in range(3):                                    # source row = y + ky - 1
        for kx in range(3):
            s = col_shifted[kx]
            if ky == 0:
                s = jnp.where(ridx >= 1, pltpu.roll(s, shift=1, axis=1), zero)
            elif ky == 2:
                s = jnp.where(ridx <= h - 2, pltpu.roll(s, shift=h - 1, axis=1), zero)
            sf = s.astype(jnp.float32)                     # hoisted cast, reused per o
            for o in range(c1):
                contrib = w1_ref[o, 0 * 9 + ky * 3 + kx] * sf[0]
                for i in range(1, c0):
                    contrib = contrib + w1_ref[o, i * 9 + ky * 3 + kx] * sf[i]
                if tap == 0:
                    hid_ref[o] = contrib + b1_ref[o]       # init with bias
                else:
                    hid_ref[o] = hid_ref[o] + contrib
            tap += 1

    # 1x1 head as a VPU weighted sum in dense (sublane, lane) layout.
    # sigmoid(z) > 0.5  <=>  z > 0  (no transcendental needed).
    z = b2_ref[0] + w2_ref[0] * jnp.maximum(hid_ref[0], 0.0)
    for o in range(1, c1):
        z = z + w2_ref[o] * jnp.maximum(hid_ref[o], 0.0)
    o_ref[0, 0] = (z > 0.0).astype(o_ref.dtype)


def seg_predict(xall, params):
    """xall: (N, 2, C0, H, W) bf16 -> thresholded predictions (N, 2, H, W) bf16."""
    n, two, c0, h, w = xall.shape
    assert two == 2
    w1 = params["w1"]                                      # (c1, c0, 3, 3)
    c1 = w1.shape[0]
    w1f = w1.reshape(c1, c0 * 9).astype(jnp.float32)       # flat taps (i, ky, kx)
    b1 = params["b1"].reshape(c1).astype(jnp.float32)
    w2 = params["w2"].reshape(c1).astype(jnp.float32)
    b2 = params["b2"].reshape(1).astype(jnp.float32)

    kernel = functools.partial(_seg_kernel, c0=c0, c1=c1, h=h, w=w)
    return pl.pallas_call(
        kernel,
        out_shape=jax.ShapeDtypeStruct((n, 2, h, w), jnp.bfloat16),
        grid_spec=pltpu.PrefetchScalarGridSpec(
            num_scalar_prefetch=0,
            grid=(n, 2),                                   # one step per image
            in_specs=[
                pl.BlockSpec((1, 1, c0, h, w), lambda i, s: (i, s, 0, 0, 0)),
                pl.BlockSpec(memory_space=pltpu.SMEM),     # w1 taps (scalars)
                pl.BlockSpec(memory_space=pltpu.SMEM),     # b1
                pl.BlockSpec(memory_space=pltpu.SMEM),     # w2
                pl.BlockSpec(memory_space=pltpu.SMEM),     # b2
            ],
            out_specs=pl.BlockSpec((1, 1, h, w), lambda i, s: (i, s, 0, 0)),
            scratch_shapes=[pltpu.VMEM((c1, h, w), jnp.float32)],
        ),
        compiler_params=pltpu.CompilerParams(
            dimension_semantics=("parallel", "parallel"),
            vmem_limit_bytes=32 * 1024 * 1024),
    )(xall, w1f, b1, w2, b2)


# --------------------------------------------------------------------------- #
# 3. output_resizer with the binary |p1 - p2| diff fused in
# --------------------------------------------------------------------------- #
def _diff_resize_kernel(p_ref, wh_ref, wwt_ref, o_ref):
    """p:(1,2,H,W) {0,1}  wh:(Ho,H)  wwt:(W,Wo)  ->  o:(1,1,Ho,Wo) f32."""
    p1 = p_ref[0, 0].astype(jnp.float32)
    p2 = p_ref[0, 1].astype(jnp.float32)
    d = jnp.abs(p1 - p2)                 # clamp(.,0,1) is a no-op on binary maps
    t = jnp.dot(wh_ref[...], d, preferred_element_type=jnp.float32)      # (Ho, W)
    o_ref[0, 0] = jnp.dot(t, wwt_ref[...], preferred_element_type=jnp.float32)


def diff_resize(preds, out_hw):
    """preds: (N, 2, H, W) binary maps -> resized |diff| : (N, 1, Ho, Wo) f32."""
    n, two, h, w = preds.shape
    assert two == 2
    ho, wo = out_hw
    wh = _bilinear_matrix(h, ho)                 # (Ho, H)  f32 for output accuracy
    wwt = _bilinear_matrix(w, wo).T              # (W, Wo)
    return pl.pallas_call(
        _diff_resize_kernel,
        out_shape=jax.ShapeDtypeStruct((n, 1, ho, wo), jnp.float32),
        grid_spec=pltpu.PrefetchScalarGridSpec(
            num_scalar_prefetch=0,
            grid=(n,),
            in_specs=[
                pl.BlockSpec((1, 2, h, w), lambda i: (i, 0, 0, 0)),
                pl.BlockSpec((ho, h), lambda i: (0, 0)),
                pl.BlockSpec((w, wo), lambda i: (0, 0)),
            ],
            out_specs=pl.BlockSpec((1, 1, ho, wo), lambda i: (i, 0, 0, 0)),
        ),
        compiler_params=pltpu.CompilerParams(
            dimension_semantics=("parallel",),
            vmem_limit_bytes=32 * 1024 * 1024),
    )(preds, wh, wwt)


# --------------------------------------------------------------------------- #
# Wrapper replicating SemiSupervisedModel.forward ('pred_diff')
# --------------------------------------------------------------------------- #
class SemiSupervisedModelPallas:
    def __init__(self, model_name="pred_diff", resize_hw=(512, 512),
                 output_size=(500, 500), hidden=8, key=None):
        if model_name.lower() != "pred_diff":
            # TODO(synk): 'siamthresh'/'siamthreshevolv' wrap an opaque checkpointed
            # feature-diff model (threshold mode) whose architecture is unavailable.
            raise NotImplementedError("only 'pred_diff' is implemented")
        self.resize_hw = tuple(resize_hw)
        self.output_size = tuple(output_size)
        key = jax.random.PRNGKey(0) if key is None else key
        c0 = 3
        k1, k2, k3, k4 = jax.random.split(key, 4)
        # Deterministic synthetic stand-in for the checkpointed crack_segmentation net.
        # TODO(synk): real weights live in crack_segmentation.pth and cannot be loaded here.
        self.params = {
            "w1": 0.1 * jax.random.normal(k1, (hidden, c0, 3, 3), jnp.float32),
            "b1": 0.01 * jax.random.normal(k2, (hidden, 1), jnp.float32),
            "w2": 0.1 * jax.random.normal(k3, (1, hidden), jnp.float32),
            "b2": 0.01 * jax.random.normal(k4, (1, 1), jnp.float32),
        }

    def __call__(self, sample_before, sample_after):
        # 1. input_resizer: both samples in one pallas_call -> (N, 2, 3, H, W) bf16
        xall = resize_pair(sample_before, sample_after, self.resize_hw)
        # 2. WrapperPredDiffModel thresholded segmentation per image -> {0, 1}
        preds = seg_predict(xall, self.params)              # (N, 2, H, W)
        # 3. clamp(|p1 - p2|, 0, 1) fused into the output_resizer -> f32 result
        return diff_resize(preds, self.output_size)         # (N, 1, Ho, Wo)


if __name__ == "__main__":
    key = jax.random.PRNGKey(0)
    kb, ka = jax.random.split(key)
    # Small demo shapes; the original module uses resize_hw=(512, 512) and
    # output_size=[500, 500] -- identical code path, just bigger tiles.
    sample_before = jax.random.uniform(kb, (2, 3, 16, 16), jnp.float32)
    sample_after = jax.random.uniform(ka, (2, 3, 16, 16), jnp.float32)

    model = SemiSupervisedModelPallas(
        "pred_diff", resize_hw=(64, 128), output_size=(48, 48))
    out = model(sample_before, sample_after)
    out = jax.block_until_ready(out)

    assert out.shape == (2, 1, 48, 48), out.shape
    assert out.dtype == jnp.float32
    assert bool(jnp.all(jnp.isfinite(out)))
    assert bool(jnp.all((out >= -1e-3) & (out <= 1.0 + 1e-3)))
    print("KERNEL_OK")
</pallas_src>

<mosaic_0001>
module attributes {stable_mosaic.version = 11 : i64} {
  func.func @_pair_resize_kernel(%arg0: i32, %arg1: i32, %arg2: memref<1x3x16x16xf32, #tpu.memory_space<vmem>>, %arg3: memref<1x3x16x16xf32, #tpu.memory_space<vmem>>, %arg4: memref<64x16xbf16, #tpu.memory_space<vmem>>, %arg5: memref<16x128xbf16, #tpu.memory_space<vmem>>, %arg6: memref<1x2x3x64x128xbf16, #tpu.memory_space<vmem>>, %arg7: memref<2x3x64x128xf32, #tpu.memory_space<vmem>>) attributes {dimension_semantics = [#tpu.dimension_semantics<parallel>, #tpu.dimension_semantics<arbitrary>], iteration_bounds = array<i64: 2, 1>, scalar_prefetch = 0 : i64, scratch_operands = 1 : i64, tpu.core_type = #tpu.core_type<tc>, window_params = [{transform_indices = @transform_0, window_bounds = array<i64: 1, 3, 16, 16>}, {transform_indices = @transform_1, window_bounds = array<i64: 1, 3, 16, 16>}, {transform_indices = @transform_2, window_bounds = array<i64: 64, 16>}, {pipeline_mode = #tpu.pipeline_mode<synchronous>, transform_indices = @transform_3, window_bounds = array<i64: 16, 128>}, {transform_indices = @transform_4, window_bounds = array<i64: 1, 2, 3, 64, 128>}]} {
    %c0_i32 = arith.constant 0 : i32
    %0 = arith.cmpi eq, %arg1, %c0_i32 : i32
    %1 = arith.extui %0 : i1 to i32
    %c0_i32_0 = arith.constant 0 : i32
    %2 = arith.cmpi ne, %1, %c0_i32_0 : i32
    scf.if %2 {
      %cst_67 = arith.constant 0.000000e+00 : f32
      %76 = vector.broadcast %cst_67 : f32 to vector<2x3x64x128xf32>
      %c0_68 = arith.constant 0 : index
      %c0_69 = arith.constant 0 : index
      %c0_70 = arith.constant 0 : index
      %c0_71 = arith.constant 0 : index
      %77 = vector.load %arg7[%c0_68, %c0_69, %c0_70, %c0_71] : memref<2x3x64x128xf32, #tpu.memory_space<vmem>>, vector<2x3x64x128xf32>
      tpu.vector_store %arg7[%c0_68, %c0_69, %c0_70, %c0_71], %76 {strides = array<i32>} : memref<2x3x64x128xf32, #tpu.memory_space<vmem>>, vector<2x3x64x128xf32>,
    } else {
    }
    %c0 = arith.constant 0 : index
    %c0_1 = arith.constant 0 : index
    %3 = vector.load %arg5[%c0, %c0_1] : memref<16x128xbf16, #tpu.memory_space<vmem>>, vector<16x128xbf16>
    %c0_2 = arith.constant 0 : index
    %c0_3 = arith.constant 0 : index
    %4 = vector.load %arg4[%c0_2, %c0_3] : memref<64x16xbf16, #tpu.memory_space<vmem>>, vector<64x16xbf16>
    %c0_4 = arith.constant 0 : index
    %c0_5 = arith.constant 0 : index
    %c0_6 = arith.constant 0 : index
    %c0_7 = arith.constant 0 : index
    %5 = vector.load %arg2[%c0_4, %c0_5, %c0_6, %c0_7] : memref<1x3x16x16xf32, #tpu.memory_space<vmem>>, vector<1x3x16x16xf32>
    %6 = vector.shape_cast %5 : vector<1x3x16x16xf32> to vector<3x16x16xf32>
    %7 = arith.truncf %6 : vector<3x16x16xf32> to vector<3x16x16xbf16>
    %8 = vector.shape_cast %7 : vector<3x16x16xbf16> to vector<48x16xbf16>
    %cst = arith.constant dense<0.000000e+00> : vector<48x128xf32>
    %9 = tpu.matmul %8, %3, %cst {dimension_numbers = #tpu.dot_dimension_numbers<[1], [0], [0], [1], [0, 0, 1, 1], [], []>} : vector<48x16xbf16>, vector<16x128xbf16>, vector<48x128xf32> -> vector<48x128xf32>
    %10 = vector.shape_cast %9 : vector<48x128xf32> to vector<3x16x128xf32>
    %11 = arith.truncf %10 : vector<3x16x128xf32> to vector<3x16x128xbf16>
    %c0_8 = arith.constant 0 : index
    %c0_9 = arith.constant 0 : index
    %c0_10 = arith.constant 0 : index
    %c0_11 = arith.constant 0 : index
    %12 = vector.load %arg7[%c0_8, %c0_9, %c0_10, %c0_11] : memref<2x3x64x128xf32, #tpu.memory_space<vmem>>, vector<1x1x64x128xf32>
    %13 = vector.shape_cast %12 : vector<1x1x64x128xf32> to vector<64x128xf32>
    %14 = vector.extract_strided_slice %11 {offsets = [0, 0, 0], sizes = [1, 16, 128], strides = [1, 1, 1]} : vector<3x16x128xbf16> to vector<1x16x128xbf16>
    %15 = vector.shape_cast %14 : vector<1x16x128xbf16> to vector<16x128xbf16>
    %cst_12 = arith.constant dense<0.000000e+00> : vector<64x128xf32>
    %16 = tpu.matmul %4, %15, %cst_12 {dimension_numbers = #tpu.dot_dimension_numbers<[1], [0], [0], [1], [0, 0, 1, 1], [], []>} : vector<64x16xbf16>, vector<16x128xbf16>, vector<64x128xf32> -> vector<64x128xf32>
    %17 = arith.addf %13, %16 : vector<64x128xf32>
    %c0_13 = arith.constant 0 : index
    %c0_14 = arith.constant 0 : index
    %c0_15 = arith.constant 0 : index
    %c0_16 = arith.constant 0 : index
    %18 = vector.load %arg7[%c0_13, %c0_14, %c0_15, %c0_16] : memref<2x3x64x128xf32, #tpu.memory_space<vmem>>, vector<1x1x64x128xf32>
    %19 = vector.shape_cast %18 : vector<1x1x64x128xf32> to vector<64x128xf32>
    %20 = vector.shape_cast %17 : vector<64x128xf32> to vector<1x1x64x128xf32>
    tpu.vector_store %arg7[%c0_13, %c0_14, %c0_15, %c0_16], %20 {strides = array<i32>} : memref<2x3x64x128xf32, #tpu.memory_space<vmem>>, vector<1x1x64x128xf32>,
    %c0_17 = arith.constant 0 : index
    %c1 = arith.constant 1 : index
    %c0_18 = arith.constant 0 : index
    %c0_19 = arith.constant 0 : index
    %21 = vector.load %arg7[%c0_17, %c1, %c0_18, %c0_19] : memref<2x3x64x128xf32, #tpu.memory_space<vmem>>, vector<1x1x64x128xf32>
    %22 = vector.shape_cast %21 : vector<1x1x64x128xf32> to vector<64x128xf32>
    %23 = vector.extract_strided_slice %11 {offsets = [1, 0, 0], sizes = [1, 16, 128], strides = [1, 1, 1]} : vector<3x16x128xbf16> to vector<1x16x128xbf16>
    %24 = vector.shape_cast %23 : vector<1x16x128xbf16> to vector<16x128xbf16>
    %cst_20 = arith.constant dense<0.000000e+00> : vector<64x128xf32>
    %25 = tpu.matmul %4, %24, %cst_20 {dimension_numbers = #tpu.dot_dimension_numbers<[1], [0], [0], [1], [0, 0, 1, 1], [], []>} : vector<64x16xbf16>, vector<16x128xbf16>, vector<64x128xf32> -> vector<64x128xf32>
    %26 = arith.addf %22, %25 : vector<64x128xf32>
    %c0_21 = arith.constant 0 : index
    %c1_22 = arith.constant 1 : index
    %c0_23 = arith.constant 0 : index
    %c0_24 = arith.constant 0 : index
    %27 = vector.load %arg7[%c0_21, %c1_22, %c0_23, %c0_24] : memref<2x3x64x128xf32, #tpu.memory_space<vmem>>, vector<1x1x64x128xf32>
    %28 = vector.shape_cast %27 : vector<1x1x64x128xf32> to vector<64x128xf32>
    %29 = vector.shape_cast %26 : vector<64x128xf32> to vector<1x1x64x128xf32>
    tpu.vector_store %arg7[%c0_21, %c1_22, %c0_23, %c0_24], %29 {strides = array<i32>} : memref<2x3x64x128xf32, #tpu.memory_space<vmem>>, vector<1x1x64x128xf32>,
    %c0_25 = arith.constant 0 : index
    %c2 = arith.constant 2 : index
    %c0_26 = arith.constant 0 : index
    %c0_27 = arith.constant 0 : index
    %30 = vector.load %arg7[%c0_25, %c2, %c0_26, %c0_27] : memref<2x3x64x128xf32, #tpu.memory_space<vmem>>, vector<1x1x64x128xf32>
    %31 = vector.shape_cast %30 : vector<1x1x64x128xf32> to vector<64x128xf32>
    %32 = vector.extract_strided_slice %11 {offsets = [2, 0, 0], sizes = [1, 16, 128], strides = [1, 1, 1]} : vector<3x16x128xbf16> to vector<1x16x128xbf16>
    %33 = vector.shape_cast %32 : vector<1x16x128xbf16> to vector<16x128xbf16>
    %cst_28 = arith.constant dense<0.000000e+00> : vector<64x128xf32>
    %34 = tpu.matmul %4, %33, %cst_28 {dimension_numbers = #tpu.dot_dimension_numbers<[1], [0], [0], [1], [0, 0, 1, 1], [], []>} : vector<64x16xbf16>, vector<16x128xbf16>, vector<64x128xf32> -> vector<64x128xf32>
    %35 = arith.addf %31, %34 : vector<64x128xf32>
    %c0_29 = arith.constant 0 : index
    %c2_30 = arith.constant 2 : index
    %c0_31 = arith.constant 0 : index
    %c0_32 = arith.constant 0 : index
    %36 = vector.load %arg7[%c0_29, %c2_30, %c0_31, %c0_32] : memref<2x3x64x128xf32, #tpu.memory_space<vmem>>, vector<1x1x64x128xf32>
    %37 = vector.shape_cast %36 : vector<1x1x64x128xf32> to vector<64x128xf32>
    %38 = vector.shape_cast %35 : vector<64x128xf32> to vector<1x1x64x128xf32>
    tpu.vector_store %arg7[%c0_29, %c2_30, %c0_31, %c0_32], %38 {strides = array<i32>} : memref<2x3x64x128xf32, #tpu.memory_space<vmem>>, vector<1x1x64x128xf32>,
    %c0_33 = arith.constant 0 : index
    %c0_34 = arith.constant 0 : index
    %c0_35 = arith.constant 0 : index
    %c0_36 = arith.constant 0 : index
    %39 = vector.load %arg3[%c0_33, %c0_34, %c0_35, %c0_36] : memref<1x3x16x16xf32, #tpu.memory_space<vmem>>, vector<1x3x16x16xf32>
    %40 = vector.shape_cast %39 : vector<1x3x16x16xf32> to vector<3x16x16xf32>
    %41 = arith.truncf %40 : vector<3x16x16xf32> to vector<3x16x16xbf16>
    %42 = vector.shape_cast %41 : vector<3x16x16xbf16> to vector<48x16xbf16>
    %cst_37 = arith.constant dense<0.000000e+00> : vector<48x128xf32>
    %43 = tpu.matmul %42, %3, %cst_37 {dimension_numbers = #tpu.dot_dimension_numbers<[1], [0], [0], [1], [0, 0, 1, 1], [], []>} : vector<48x16xbf16>, vector<16x128xbf16>, vector<48x128xf32> -> vector<48x128xf32>
    %44 = vector.shape_cast %43 : vector<48x128xf32> to vector<3x16x128xf32>
    %45 = arith.truncf %44 : vector<3x16x128xf32> to vector<3x16x128xbf16>
    %c1_38 = arith.constant 1 : index
    %c0_39 = arith.constant 0 : index
    %c0_40 = arith.constant 0 : index
    %c0_41 = arith.constant 0 : index
    %46 = vector.load %arg7[%c1_38, %c0_39, %c0_40, %c0_41] : memref<2x3x64x128xf32, #tpu.memory_space<vmem>>, vector<1x1x64x128xf32>
    %47 = vector.shape_cast %46 : vector<1x1x64x128xf32> to vector<64x128xf32>
    %48 = vector.extract_strided_slice %45 {offsets = [0, 0, 0], sizes = [1, 16, 128], strides = [1, 1, 1]} : vector<3x16x128xbf16> to vector<1x16x128xbf16>
    %49 = vector.shape_cast %48 : vector<1x16x128xbf16> to vector<16x128xbf16>
    %cst_42 = arith.constant dense<0.000000e+00> : vector<64x128xf32>
    %50 = tpu.matmul %4, %49, %cst_42 {dimension_numbers = #tpu.dot_dimension_numbers<[1], [0], [0], [1], [0, 0, 1, 1], [], []>} : vector<64x16xbf16>, vector<16x128xbf16>, vector<64x128xf32> -> vector<64x128xf32>
    %51 = arith.addf %47, %50 : vector<64x128xf32>
    %c1_43 = arith.constant 1 : index
    %c0_44 = arith.constant 0 : index
    %c0_45 = arith.constant 0 : index
    %c0_46 = arith.constant 0 : index
    %52 = vector.load %arg7[%c1_43, %c0_44, %c0_45, %c0_46] : memref<2x3x64x128xf32, #tpu.memory_space<vmem>>, vector<1x1x64x128xf32>
    %53 = vector.shape_cast %52 : vector<1x1x64x128xf32> to vector<64x128xf32>
    %54 = vector.shape_cast %51 : vector<64x128xf32> to vector<1x1x64x128xf32>
    tpu.vector_store %arg7[%c1_43, %c0_44, %c0_45, %c0_46], %54 {strides = array<i32>} : memref<2x3x64x128xf32, #tpu.memory_space<vmem>>, vector<1x1x64x128xf32>,
    %c1_47 = arith.constant 1 : index
    %c1_48 = arith.constant 1 : index
    %c0_49 = arith.constant 0 : index
    %c0_50 = arith.constant 0 : index
    %55 = vector.load %arg7[%c1_47, %c1_48, %c0_49, %c0_50] : memref<2x3x64x128xf32, #tpu.memory_space<vmem>>, vector<1x1x64x128xf32>
    %56 = vector.shape_cast %55 : vector<1x1x64x128xf32> to vector<64x128xf32>
    %57 = vector.extract_strided_slice %45 {offsets = [1, 0, 0], sizes = [1, 16, 128], strides = [1, 1, 1]} : vector<3x16x128xbf16> to vector<1x16x128xbf16>
    %58 = vector.shape_cast %57 : vector<1x16x128xbf16> to vector<16x128xbf16>
    %cst_51 = arith.constant dense<0.000000e+00> : vector<64x128xf32>
    %59 = tpu.matmul %4, %58, %cst_51 {dimension_numbers = #tpu.dot_dimension_numbers<[1], [0], [0], [1], [0, 0, 1, 1], [], []>} : vector<64x16xbf16>, vector<16x128xbf16>, vector<64x128xf32> -> vector<64x128xf32>
    %60 = arith.addf %56, %59 : vector<64x128xf32>
    %c1_52 = arith.constant 1 : index
    %c1_53 = arith.constant 1 : index
    %c0_54 = arith.constant 0 : index
    %c0_55 = arith.constant 0 : index
    %61 = vector.load %arg7[%c1_52, %c1_53, %c0_54, %c0_55] : memref<2x3x64x128xf32, #tpu.memory_space<vmem>>, vector<1x1x64x128xf32>
    %62 = vector.shape_cast %61 : vector<1x1x64x128xf32> to vector<64x128xf32>
    %63 = vector.shape_cast %60 : vector<64x128xf32> to vector<1x1x64x128xf32>
    tpu.vector_store %arg7[%c1_52, %c1_53, %c0_54, %c0_55], %63 {strides = array<i32>} : memref<2x3x64x128xf32, #tpu.memory_space<vmem>>, vector<1x1x64x128xf32>,
    %c1_56 = arith.constant 1 : index
    %c2_57 = arith.constant 2 : index
    %c0_58 = arith.constant 0 : index
    %c0_59 = arith.constant 0 : index
    %64 = vector.load %arg7[%c1_56, %c2_57, %c0_58, %c0_59] : memref<2x3x64x128xf32, #tpu.memory_space<vmem>>, vector<1x1x64x128xf32>
    %65 = vector.shape_cast %64 : vector<1x1x64x128xf32> to vector<64x128xf32>
    %66 = vector.extract_strided_slice %45 {offsets = [2, 0, 0], sizes = [1, 16, 128], strides = [1, 1, 1]} : vector<3x16x128xbf16> to vector<1x16x128xbf16>
    %67 = vector.shape_cast %66 : vector<1x16x128xbf16> to vector<16x128xbf16>
    %cst_60 = arith.constant dense<0.000000e+00> : vector<64x128xf32>
    %68 = tpu.matmul %4, %67, %cst_60 {dimension_numbers = #tpu.dot_dimension_numbers<[1], [0], [0], [1], [0, 0, 1, 1], [], []>} : vector<64x16xbf16>, vector<16x128xbf16>, vector<64x128xf32> -> vector<64x128xf32>
    %69 = arith.addf %65, %68 : vector<64x128xf32>
    %c1_61 = arith.constant 1 : index
    %c2_62 = arith.constant 2 : index
    %c0_63 = arith.constant 0 : index
    %c0_64 = arith.constant 0 : index
    %70 = vector.load %arg7[%c1_61, %c2_62, %c0_63, %c0_64] : memref<2x3x64x128xf32, #tpu.memory_space<vmem>>, vector<1x1x64x128xf32>
    %71 = vector.shape_cast %70 : vector<1x1x64x128xf32> to vector<64x128xf32>
    %72 = vector.shape_cast %69 : vector<64x128xf32> to vector<1x1x64x128xf32>
    tpu.vector_store %arg7[%c1_61, %c2_62, %c0_63, %c0_64], %72 {strides = array<i32>} : memref<2x3x64x128xf32, #tpu.memory_space<vmem>>, vector<1x1x64x128xf32>,
    %c0_i32_65 = arith.constant 0 : i32
    %73 = arith.cmpi eq, %arg1, %c0_i32_65 : i32
    %74 = arith.extui %73 : i1 to i32
    %c0_i32_66 = arith.constant 0 : i32
    %75 = arith.cmpi ne, %74, %c0_i32_66 : i32
    scf.if %75 {
      %c0_67 = arith.constant 0 : index
      %c0_68 = arith.constant 0 : index
      %c0_69 = arith.constant 0 : index
      %c0_70 = arith.constant 0 : index
      %76 = vector.load %arg7[%c0_67, %c0_68, %c0_69, %c0_70] : memref<2x3x64x128xf32, #tpu.memory_space<vmem>>, vector<2x3x64x128xf32>
      %77 = arith.truncf %76 : vector<2x3x64x128xf32> to vector<2x3x64x128xbf16>
      %c0_71 = arith.constant 0 : index
      %c0_72 = arith.constant 0 : index
      %c0_73 = arith.constant 0 : index
      %c0_74 = arith.constant 0 : index
      %c0_75 = arith.constant 0 : index
      %78 = vector.load %arg6[%c0_71, %c0_72, %c0_73, %c0_74, %c0_75] : memref<1x2x3x64x128xbf16, #tpu.memory_space<vmem>>, vector<1x2x3x64x128xbf16>
      %79 = vector.shape_cast %78 : vector<1x2x3x64x128xbf16> to vector<2x3x64x128xbf16>
      %80 = vector.shape_cast %77 : vector<2x3x64x128xbf16> to vector<1x2x3x64x128xbf16>
      tpu.vector_store %arg6[%c0_71, %c0_72, %c0_73, %c0_74, %c0_75], %80 {strides = array<i32>} : memref<1x2x3x64x128xbf16, #tpu.memory_space<vmem>>, vector<1x2x3x64x128xbf16>,
    } else {
    }
    return
  }
  func.func @transform_0(%arg0: i32, %arg1: i32) -> (i32, i32, i32, i32) {
    %c0_i32 = arith.constant 0 : i32
    %c0_i32_0 = arith.constant 0 : i32
    %c0_i32_1 = arith.constant 0 : i32
    return %arg0, %c0_i32, %arg1, %c0_i32_0 : i32, i32, i32, i32
  }
  func.func @transform_1(%arg0: i32, %arg1: i32) -> (i32, i32, i32, i32) {
    %c0_i32 = arith.constant 0 : i32
    %c0_i32_0 = arith.constant 0 : i32
    %c0_i32_1 = arith.constant 0 : i32
    return %arg0, %c0_i32, %arg1, %c0_i32_0 : i32, i32, i32, i32
  }
  func.func @transform_2(%arg0: i32, %arg1: i32) -> (i32, i32) {
    %c0_i32 = arith.constant 0 : i32
    %c0_i32_0 = arith.constant 0 : i32
    return %c0_i32, %arg1 : i32, i32
  }
  func.func @transform_3(%arg0: i32, %arg1: i32) -> (i32, i32) {
    %c0_i32 = arith.constant 0 : i32
    %c0_i32_0 = arith.constant 0 : i32
    %c0_i32_1 = arith.constant 0 : i32
    return %c0_i32, %c0_i32_0 : i32, i32
  }
  func.func @transform_4(%arg0: i32, %arg1: i32) -> (i32, i32, i32, i32, i32) {
    %c0_i32 = arith.constant 0 : i32
    %c0_i32_0 = arith.constant 0 : i32
    %c0_i32_1 = arith.constant 0 : i32
    %c0_i32_2 = arith.constant 0 : i32
    %c0_i32_3 = arith.constant 0 : i32
    return %arg0, %c0_i32, %c0_i32_0, %c0_i32_1, %c0_i32_2 : i32, i32, i32, i32, i32
  }
}

</mosaic_0001>

<bundles_post_ra>
// kernel: tpu_custom_call.1
= control target key start
LH: loop header
LB: loop body
LE: loop exit
PB: predicated region body
PF: predicated region fallthrough
CT: control target
= control target key end

     0   :  { %9 = vsyncpa [#allocation4], 0  ;;  %s2555_s0 = inlined_call_operand.hbm [shape: f32[2,3,16,16], index: 0, kind: input, shape index: {}]   ;;  %s2556_s1 = inlined_call_operand.hbm [shape: f32[2,3,16,16], index: 1, kind: input, shape index: {}]   ;;  %s2557_s2 = inlined_call_operand.vmem [shape: bf16[64,16], index: 2, kind: input, shape index: {}]   ;;  %s2558_s3 = inlined_call_operand.vmem [shape: bf16[16,128], index: 3, kind: input, shape index: {}]   ;;  %s2559_s4 = inlined_call_operand.hbm [shape: bf16[2,2,3,64,128], index: 4, kind: output, shape index: {}]  }
   0x1   :  { %11 = vsyncpa [#allocation4 + $0x1], 0 }
   0x2   :  { %12 = vsyncpa [#allocation7], 0 }
   0x3   :  { %14 = vsyncpa [#allocation7 + $0x1], 0 }
   0x4   :  { %15 = vsyncpa [#allocation5], 0 }
   0x5   :  { %17 = vsyncpa [#allocation5 + $0x1], 0  ;;  %s2200_s15 = smov 0   ;;  %s2202_s16 = smov 0  }
   0x6   :  { %s2204_s17 = smov 0   ;;  %s2206_s18 = smov 0  }
   0x7   :  { %s2208_s19 = smov 0   ;;  %s2210_s20 = smov 0  }
   0x8 LB: > { %s1522_s21 = sadd.s32 4294967295, %s2164_s20   ;;  %s1523_s22 = sadd.s32 4294967294, %s2164_s20   ;;  %s2164_s20 = sphi %s2210_s20, %s23_s20   ;;  %s2160_s19 = sphi %s2208_s19, %s2579_s19   ;;  %s2156_s18 = sphi %s2206_s18, %s2578_s18   ;;  %s2152_s17 = sphi %s2204_s17, %s2577_s17   ;;  %s2148_s16 = sphi %s2202_s16, %s2576_s16   ;;  %s2144_s15 = sphi %s2200_s15, %s2575_s15  }
   0x9   : > { %s35_s23 = sadd.s32 1, %s2160_s19  ;;  %s44_s24 = sadd.s32 1, %s2152_s17 }
   0xa   : > { %p37_p0 = scmp.ge.s32.totalorder %s35_s23, 2  ;;  %p51_p1 = scmp.ne.s32.totalorder %s2152_s17, %s2148_s16 }
   0xb   : > { %p52_p2 = scmp.eq.s32.totalorder %s2164_s20, 0  ;;  %p57_p3 = scmp.ne.s32.totalorder %s2148_s16, %s2144_s15 }
   0xc   : > { %s2581_s23 = smov (%p37_p0, %s35_s23), 0  ;;  %p58_p5 = scmp.eq.s32.totalorder %s1522_s21, 0 }
   0xd   : > { %p2241_p4 = por %p52_p2, %p51_p1  ;;  %s39_s26 = ssub.s32 %s2160_s19, %s2581_s23 }
   0xe   : > { %p156_p6 = scmp.eq.s32.totalorder %s1522_s21, 1  ;;  %p42_p7 = scmp.eq.s32.totalorder %s39_s26, 0 }
   0xf   : > { %p2247_p8 = por %p58_p5, %p57_p3  ;;  %p162_p10 = scmp.eq.s32.totalorder %s1523_s22, 1 }
  0x10   : > { %p2251_p9 = por %p156_p6, %p51_p1  ;;  %p1957_p13 = scmp.lt.s32.totalorder %s2164_s20, 2 }
  0x11   : > { %s2564_s27 = scalar_select %p2247_p8, 1, 0 }
  0x12   : > { %s2565_s28 = scalar_select %p2251_p9, 1, 0 }
  0x13   : > { %s2256_s29 = scalar_select %p42_p7, %s2152_s17, %s44_s24  }
  0x14   : > { %p2258_p11 = por %p162_p10, %p57_p3  ;;  %s2265_s5 = sand.u32 1, %s2152_s17  }
  0x15   : > { %s1933_s6 = smul.u32 48, %s2265_s5  ;;  %p2271_p0 = pnand %p1957_p13, %p2241_p4 }
  0x16   : > { %s2566_s30 = scalar_select %p2258_p11, 1, 0 }
  0x17   : > { %s1934_s7 = smul.u32 768, %s2160_s19  ;;  %s196_s12 = scalar_lea.vmem [#allocation3], %s1933_s6 }
  0x18   : > { %s205_s13 = sshll.u32 %s196_s12, 4  ;;  %s193_s14 = scalar_lea.sflag [#allocation4], %s2265_s5  ;;  %s2284_s13 = int_to_ptr.vmem [resolvable:$true] %s205_s13 }
  0x19   : > { %s2280_s11 = scalar_lea.hbm %s2555_s0, %s1934_s7  ;;  %p2020_p3 = pneg %p2271_p0 }
  0x1a   : > { %s2018_s21 = scalar_lea.hbm %s2280_s11, 768  ;;  %s2023_s25 = scalar_lea.hbm %s2555_s0, 1536 }
  0x1b   : > { %p2019_p2 = scmp.ne.s32.totalorder %s2280_s11, %s2018_s21  ;;  %p2024_p6 = scmp.lt.u32.totalorder %s2280_s11, %s2555_s0 }
  0x1c   : > { %p2025_p7 = scmp.lt.u32.totalorder %s2023_s25, %s2018_s21  ;;  %p2027_p13 = scmp.lt.u32.totalorder %s2018_s21, %s2280_s11 }
  0x1d   : > { %p2021_p4 = pnand %p2020_p3, %p2019_p2 }
  0x1e   : > { %p2026_p10 = por %p2025_p7, %p2024_p6 }
  0x1f   : > { %p2022_p5 = pneg %p2021_p4 }
  0x20   : > { %p2028_p12 = por %p2027_p13, %p2026_p10 }
  0x22   : > { %p2029_p1 = pnand %p2028_p12, %p2022_p5 }
  0x24   : > { %2032 = shalt.err (!%p2029_p1)
}
  0x25   : > { %s2033_s10 = scalar_lea.vmem %s2284_s13, 768  ;;  %s2166_s12 = smov [#allocation3]  }
  0x26   : > { %p2034_p2 = scmp.ne.s32.totalorder %s2284_s13, %s2033_s10  ;;  %s2038_s22 = sshll.u32 %s2166_s12, 4  ;;  %s2039_s22 = int_to_ptr.vmem [resolvable:$false] %s2038_s22 }
  0x27   : > { %s2040_s24 = scalar_lea.vmem %s2039_s22, 1536  ;;  %p2041_p9 = scmp.lt.s32.totalorder %s2284_s13, %s2039_s22 }
  0x28   : > { %p2036_p4 = pnand %p2034_p2, %p2020_p3  ;;  %p2042_p6 = scmp.lt.s32.totalorder %s2040_s24, %s2033_s10 }
  0x2a   : > { %p2037_p11 = pneg %p2036_p4  ;;  %p2043_p7 = por %p2042_p6, %p2041_p9 }
  0x2c   : > { %p2044_p10 = pnand %p2043_p7, %p2037_p11 }
  0x2e   : > { %2047 = shalt.err (!%p2044_p10)
}
  0x2f   : > { %s2561_s21 = smov 128   ;;  %s2168_s25 = smov 8  }
  0x30   : > { %1949 = dma.hbm_to_vmem [thread:$0]  (!%p2271_p0), %s2280_s11, 768, %s2284_s13, %s193_s14, %s2561_s21, %s2561_s21, %s2168_s25  }
  0x31   : > { %p236_p9 = scmp.lt.s32.totalorder %s2164_s20, 3  ;;  %s2324_s10 = scalar_lea.hbm %s2556_s1, %s1934_s7 }
  0x32   : > { %p2568_p11 = scmp.ge.s32.totalorder %s2164_s20, 1  ;;  %s219_s22 = scalar_lea.vmem [#allocation6], %s1933_s6 }
  0x33   : > { %s228_s24 = sshll.u32 %s219_s22, 4  ;;  %s216_s11 = scalar_lea.sflag [#allocation7], %s2265_s5  ;;  %s2334_s24 = int_to_ptr.vmem [resolvable:$true] %s228_s24 }
  0x34   : > { %p2328_p12 = pnand %p2568_p11, %p236_p9  ;;  %s2048_s13 = scalar_lea.hbm %s2324_s10, 768 }
  0x35   : > { %p2049_p1 = scmp.ne.s32.totalorder %s2324_s10, %s2048_s13  ;;  %s2053_s26 = scalar_lea.hbm %s2556_s1, 1536 }
  0x36   : > { %p2054_p2 = scmp.lt.u32.totalorder %s2324_s10, %s2556_s1  ;;  %p2055_p4 = scmp.lt.u32.totalorder %s2053_s26, %s2048_s13 }
  0x37   : > { %p2051_p5 = pnand %p2049_p1, %p2020_p3  ;;  %p2057_p7 = scmp.lt.u32.totalorder %s2048_s13, %s2324_s10 }
  0x38   : > { %p2056_p6 = por %p2055_p4, %p2054_p2 }
  0x39   : > { %p2052_p13 = pneg %p2051_p5 }
  0x3a   : > { %p2058_p10 = por %p2057_p7, %p2056_p6 }
  0x3c   : > { %p2059_p9 = pnand %p2058_p10, %p2052_p13 }
  0x3e   : > { %2062 = shalt.err (!%p2059_p9)
}
  0x3f   : > { %s2063_s6 = scalar_lea.vmem %s2334_s24, 768  ;;  %s2169_s22 = smov [#allocation6]  }
  0x40   : > { %p2064_p11 = scmp.ne.s32.totalorder %s2334_s24, %s2063_s6  ;;  %s2068_s7 = sshll.u32 %s2169_s22, 4  ;;  %s2069_s7 = int_to_ptr.vmem [resolvable:$false] %s2068_s7 }
  0x41   : > { %s2070_s21 = scalar_lea.vmem %s2069_s7, 1536  ;;  %p2071_p8 = scmp.lt.s32.totalorder %s2334_s24, %s2069_s7 }
  0x42   : > { %p2066_p1 = pnand %p2064_p11, %p2020_p3  ;;  %p2072_p2 = scmp.lt.s32.totalorder %s2070_s21, %s2063_s6 }
  0x44   : > { %p2067_p5 = pneg %p2066_p1  ;;  %p2073_p4 = por %p2072_p2, %p2071_p8 }
  0x46   : > { %p2074_p6 = pnand %p2073_p4, %p2067_p5 }
  0x48   : > { %2077 = shalt.err (!%p2074_p6)
}
  0x49   : > { %s2570_s13 = smov 128   ;;  %240 = sbr.rel (%p2328_p12) target bundleno = 816 (0x330), region = 36 }
  0x4a   : > { %1952 = dma.hbm_to_vmem [thread:$0]  (!%p2271_p0), %s2324_s10, 768, %s2334_s24, %s216_s11, %s2570_s13, %s2570_s13, %s2168_s25  }
  0x4b   : > { %s2368_s14 = sand.u32 (!%p2328_p12), 1, %s2148_s16   ;;  %p2571_p8 = scmp.ne.s32.totalorder (!%p2328_p12), %s2564_s27, 0 }
  0x4c   : > { %s1937_s26 = smul.u32 (!%p2328_p12), 48, %s2368_s14  ;;  %s243_s9 = scalar_lea.sflag (!%p2328_p12), [#allocation4], %s2368_s14 }
  0x4e   : > { %s246_s8 = scalar_lea.vmem (!%p2328_p12), [#allocation3], %s1937_s26 }
  0x50   : > { %2131 = dma.done.wait (%p2571_p8), %s243_s9, 768  }
  0x51   : > { %2133 = vsyncadd (%p2571_p8), %s243_s9, 4294966528  ;;  %s252_s5 = scalar_lea.sflag [#allocation7], %s2368_s14  ;;  %s2377_s25 = scalar_lea.vmem [#allocation6], %s1937_s26 }
  0x52   : > { %2135 = dma.done.wait (%p2571_p8), %s252_s5, 768  }
  0x53   : > { %2137 = vsyncadd (%p2571_p8), %s252_s5, 4294966528  ;;  %v2170_v0 = vmov 0.0   ;;  %vm2171_vm0 = vmmov 0   ;;  %v2013_v1 = vld [vmem:[%s2558_s3] sm:$0xff]   ;;  %v359_v3 = vld [vmem:[%s246_s8 + $0x8] sm:$0xff]  ;;  %vm373_vm1 = vcmask 130048  }
  0x54   : > { %1845 = vmatprep.subr.bf16.mxu0 %v2170_v0  ;;  %1847 = vmatprep.mubr.msk.bf16.mxu0 %vm2171_vm0, %v2170_v0  ;;  %v358_v2 = vld [vmem:[%s246_s8] sm:$0xff]  ;;  %v360_v5 = vld [vmem:[%s246_s8 + $0x10] sm:$0xff]  ;;  %v361_v6 = vld [vmem:[%s246_s8 + $0x18] sm:$0xff]  ;;  %s1938_s26 = smul.u32 192, %s2368_s14  ;;  %s1384_s12 = scalar_lea.sflag [#allocation5], %s2368_s14 }
  0x55   : > { %1846 = vmatpush3.bf16.msra.mxu0 %v2013_v1  ;;  %v364_v4 = vpack.c.bf16 %v359_v3, %v358_v2  ;;  %v365_v7 = vpack.c.bf16 %v361_v6, %v360_v5  ;;  %v2394_v8 = vld [vmem:[%s2557_s2] sm:$0xff]   ;;  %v363_v10 = vld [vmem:[%s246_s8 + $0x28] sm:$0xff]  ;;  %v2409_v18 = vld [vmem:[%s2557_s2 + $0x10] sm:$0xff]   ;;  %p2572_p3 = scmp.ne.s32.totalorder %s2565_s28, 0  ;;  %s2172_s24 = smov [#allocation8]  }
  0x56   : > { %1861 = vmatprep.mubr.msk.bf16.mxu1 %vm373_vm1, %v2394_v8  ;;  %v362_v9 = vld [vmem:[%s246_s8 + $0x20] sm:$0xff]  ;;  %v2404_v17 = vld [vmem:[%s2557_s2 + $0x8] sm:$0xff]   ;;  %v2418_v24 = vld [vmem:[%s2557_s2 + $0x18] sm:$0xff]   ;;  %s2453_s9 = scalar_lea.vmem [#allocation8], %s1938_s26  ;;  %s1939_s8 = smul.u32 3072, %s2156_s18 }
  0x57   : > { %v366_v11 = vpack.c.bf16 %v363_v10, %v362_v9  ;;  %v744_v25 = vld [vmem:[%s2377_s25] sm:$0xff]  ;;  %v745_v26 = vld [vmem:[%s2377_s25 + $0x8] sm:$0xff]  ;;  %v746_v28 = vld [vmem:[%s2377_s25 + $0x10] sm:$0xff]  ;;  %s1397_s5 = sshll.u32 %s2453_s9, 4  ;;  %s2082_s11 = sshll.u32 %s2172_s24, 4  ;;  %s2502_s5 = int_to_ptr.vmem [resolvable:$true] %s1397_s5  ;;  %s2083_s11 = int_to_ptr.vmem [resolvable:$false] %s2082_s11 }
  0x58   : > { %1848 = vmatmul.mubr.msk.bf16.vlgmr.msra.gmra.mrb[0].mxu0 %vm373_vm1, %v364_v4  ;;  %v750_v27 = vpack.c.bf16 %v745_v26, %v744_v25  ;;  %v747_v29 = vld [vmem:[%s2377_s25 + $0x18] sm:$0xff]  ;;  %v748_v31 = vld [vmem:[%s2377_s25 + $0x20] sm:$0xff]  ;;  %v749_v32 = vld [vmem:[%s2377_s25 + $0x28] sm:$0xff]  ;;  %s2500_s18 = scalar_lea.hbm %s2559_s4, %s1939_s8  ;;  %s2078_s27 = scalar_lea.vmem %s2502_s5, 3072 }
  0x59   : > { %1851 = vmatprep.mubr.msk.bf16.mxu0 %vm2171_vm0, %v2170_v0  ;;  %v751_v30 = vpack.c.bf16 %v747_v29, %v746_v28  ;;  %v752_v33 = vpack.c.bf16 %v749_v32, %v748_v31  ;;  %p2079_p0 = scmp.ne.s32.totalorder %s2502_s5, %s2078_s27  ;;  %s2084_s6 = scalar_lea.vmem %s2083_s11, 6144 }
  0x5a   : > { %p2085_p7 = scmp.lt.s32.totalorder %s2502_s5, %s2083_s11  ;;  %p2086_p10 = scmp.lt.s32.totalorder %s2084_s6, %s2078_s27 }
  0x5b   : > { %p2080_p12 = pnand %p2079_p0, %p2572_p3 }
  0x5c   : > { %p2087_p9 = por %p2086_p10, %p2085_p7 }
  0x5d   : > { %p2081_p13 = pneg %p2080_p12 }
  0x5f   : > { %p2088_p11 = pnand %p2087_p9, %p2081_p13 }
  0x60   : > { %1852 = vmatmul.mubr.msk.bf16.gmra.mrb[4].mxu0 %vm373_vm1, %v365_v7 }
  0x61   : > { %1855 = vmatprep.mubr.msk.bf16.mxu0 %vm2171_vm0, %v2170_v0 }
  0x68   : > { %1856 = vmatmul.mubr.msk.bf16.gmra.mrb[8].mxu0 %vm373_vm1, %v366_v11 }
  0x69   : > { %1881 = vmatprep.mubr.msk.bf16.mxu0 %vm373_vm1, %v2394_v8 }
 0x12b   : > { %v417_v12 = vpop.f32.mrb[0].mxu0 }
 0x12c   : > { %v1849_v13 = vpop.f32.mrb[1].mxu0 }
 0x12d   : > { %v420_v14 = vpop.f32.mrb[2].mxu0 }
 0x12e   : > { %v440_v15 = vpack.c.bf16 %v420_v14, %v417_v12  ;;  %v1850_v16 = vpop.f32.mrb[3].mxu0 }
 0x130   : > { %1859 = vmatprep.subr.bf16.mxu1 %v440_v15 }
 0x131   : > { %1860 = vmatpush3.bf16.msra.mxu1 %v440_v15 }
 0x133   : > { %v425_v19 = vpop.f32.mrb[4].mxu0 }
 0x134   : > { %1862 = vmatmul.mubr.msk.bf16.vlgmr.msra.gmra.mrb[0].mxu1 %vm373_vm1, %v2404_v17  ;;  %v1853_v20 = vpop.f32.mrb[5].mxu0 }
 0x135   : > { %v428_v21 = vpop.f32.mrb[6].mxu0  ;;  %1865 = vmatprep.mubr.msk.bf16.mxu1 %vm373_vm1, %v2409_v18 }
 0x136   : > { %v441_v22 = vpack.c.bf16 %v428_v21, %v425_v19  ;;  %v1854_v23 = vpop.f32.mrb[7].mxu0 }
 0x138   : > { %1869 = vmatprep.subr.bf16.mxu1 %v441_v22 }
 0x139   : > { %1870 = vmatpush3.bf16.msra.mxu1 %v441_v22 }
 0x13a   : > { %1889 = vmatprep.subr.bf16.mxu1 %v2170_v0 }
 0x13b   : > { %v433_v34 = vpop.f32.mrb[8].mxu0 }
 0x13c   : > { %1866 = vmatmul.mubr.msk.bf16.gmra.mrb[4].mxu1 %vm373_vm1, %v2418_v24  ;;  %v1857_v35 = vpop.f32.mrb[9].mxu0 }
 0x13d   : > { %1871 = vmatprep.mubr.msk.bf16.mxu1 %vm373_vm1, %v2394_v8  ;;  %v436_v36 = vpop.f32.mrb[10].mxu0 }
 0x13e   : > { %v442_v37 = vpack.c.bf16 %v436_v36, %v433_v34  ;;  %v1858_v38 = vpop.f32.mrb[11].mxu0 }
 0x140   : > { %1879 = vmatprep.subr.bf16.mxu0 %v442_v37 }
 0x141   : > { %1880 = vmatpush3.bf16.msra.mxu0 %v442_v37 }
 0x144   : > { %1872 = vmatmul.mubr.msk.bf16.vlgmr.msra.gmra.mrb[8].mxu1 %vm373_vm1, %v2404_v17  ;;  %1882 = vmatmul.mubr.msk.bf16.vlgmr.msra.gmra.mrb[12].mxu0 %vm373_vm1, %v2404_v17 }
 0x145   : > { %1875 = vmatprep.mubr.msk.bf16.mxu1 %vm373_vm1, %v2409_v18  ;;  %1890 = vmatpush3.bf16.msra.mxu1 %v2013_v1 }
 0x146   : > { %1885 = vmatprep.mubr.msk.bf16.mxu0 %vm373_vm1, %v2409_v18 }
 0x14c   : > { %1876 = vmatmul.mubr.msk.bf16.gmra.mrb[12].mxu1 %vm373_vm1, %v2418_v24  ;;  %1886 = vmatmul.mubr.msk.bf16.gmra.mrb[16].mxu0 %vm373_vm1, %v2418_v24 }
 0x14d   : > { %1891 = vmatprep.mubr.msk.bf16.mxu1 %vm2171_vm0, %v2170_v0  ;;  %1905 = vmatprep.mubr.msk.bf16.mxu0 %vm373_vm1, %v2394_v8 }
 0x154   : > { %1892 = vmatmul.mubr.msk.bf16.vlgmr.msra.gmra.mrb[16].mxu1 %vm373_vm1, %v750_v27 }
 0x155   : > { %1895 = vmatprep.mubr.msk.bf16.mxu1 %vm2171_vm0, %v2170_v0 }
 0x15c   : > { %1896 = vmatmul.mubr.msk.bf16.gmra.mrb[20].mxu1 %vm373_vm1, %v751_v30 }
 0x15d   : > { %1899 = vmatprep.mubr.msk.bf16.mxu1 %vm2171_vm0, %v2170_v0 }
 0x164   : > { %1900 = vmatmul.mubr.msk.bf16.gmra.mrb[24].mxu1 %vm373_vm1, %v752_v33 }
 0x165   : > { %1925 = vmatprep.mubr.msk.bf16.mxu1 %vm373_vm1, %v2394_v8 }
 0x207   : > { %v1863_v39 = vpop.f32.mrb[0].mxu1 }
 0x208   : > { %v517_v40 = vpop.f32.mrb[1].mxu1 }
 0x209   : > { %v1864_v41 = vpop.f32.mrb[2].mxu1 }
 0x20a   : > { %v1672_v42 = vpack.c.bf16 %v1864_v41, %v1863_v39  ;;  %v520_v43 = vpop.f32.mrb[3].mxu1 }
 0x20b   : > { %v1667_v44 = vpack.c.bf16 %v520_v43, %v517_v40 }
 0x20c   : > { %1784 = vst [vmem:[%s2453_s9 + $0x8] sm:$0xff] %v1672_v42  }
 0x20d   : > { %1668 = vst [vmem:[%s2453_s9] sm:$0xff] %v1667_v44  }
 0x20f   : > { %v1867_v45 = vpop.f32.mrb[4].mxu1 }
 0x210   : > { %v533_v46 = vpop.f32.mrb[5].mxu1 }
 0x211   : > { %v1868_v47 = vpop.f32.mrb[6].mxu1 }
 0x212   : > { %v1682_v48 = vpack.c.bf16 %v1868_v47, %v1867_v45  ;;  %v536_v49 = vpop.f32.mrb[7].mxu1 }
 0x213   : > { %v1677_v50 = vpack.c.bf16 %v536_v49, %v533_v46 }
 0x214   : > { %1786 = vst [vmem:[%s2453_s9 + $0x18] sm:$0xff] %v1682_v48  }
 0x215   : > { %1785 = vst [vmem:[%s2453_s9 + $0x10] sm:$0xff] %v1677_v50  }
 0x217   : > { %v1873_v51 = vpop.f32.mrb[8].mxu1 }
 0x218   : > { %v607_v52 = vpop.f32.mrb[9].mxu1 }
 0x219   : > { %v1874_v53 = vpop.f32.mrb[10].mxu1 }
 0x21a   : > { %v1692_v54 = vpack.c.bf16 %v1874_v53, %v1873_v51  ;;  %v610_v55 = vpop.f32.mrb[11].mxu1 }
 0x21b   : > { %v1687_v56 = vpack.c.bf16 %v610_v55, %v607_v52 }
 0x21c   : > { %1788 = vst [vmem:[%s2453_s9 + $0x28] sm:$0xff] %v1692_v54  }
 0x21d   : > { %1787 = vst [vmem:[%s2453_s9 + $0x20] sm:$0xff] %v1687_v56  }
 0x21f   : > { %v1877_v57 = vpop.f32.mrb[12].mxu1 }
 0x220   : > { %v623_v58 = vpop.f32.mrb[13].mxu1 }
 0x221   : > { %v1878_v59 = vpop.f32.mrb[14].mxu1 }
 0x222   : > { %v1702_v60 = vpack.c.bf16 %v1878_v59, %v1877_v57  ;;  %v626_v61 = vpop.f32.mrb[15].mxu1 }
 0x223   : > { %v1697_v62 = vpack.c.bf16 %v626_v61, %v623_v58 }
 0x224   : > { %1790 = vst [vmem:[%s2453_s9 + $0x38] sm:$0xff] %v1702_v60  }
 0x225   : > { %1789 = vst [vmem:[%s2453_s9 + $0x30] sm:$0xff] %v1697_v62  }
 0x227   : > { %v796_v63 = vpop.f32.mrb[16].mxu1 }
 0x228   : > { %v1893_v0 = vpop.f32.mrb[17].mxu1 }
 0x229   : > { %v799_v1 = vpop.f32.mrb[18].mxu1 }
 0x22a   : > { %v819_v2 = vpack.c.bf16 %v799_v1, %v796_v63  ;;  %v1894_v3 = vpop.f32.mrb[19].mxu1 }
 0x22c   : > { %1903 = vmatprep.subr.bf16.mxu0 %v819_v2 }
 0x22d   : > { %1904 = vmatpush3.bf16.msra.mxu0 %v819_v2 }
 0x22f   : > { %v804_v4 = vpop.f32.mrb[20].mxu1 }
 0x230   : > { %v1897_v5 = vpop.f32.mrb[21].mxu1  ;;  %1906 = vmatmul.mubr.msk.bf16.vlgmr.msra.gmra.mrb[20].mxu0 %vm373_vm1, %v2404_v17 }
 0x231   : > { %v807_v6 = vpop.f32.mrb[22].mxu1  ;;  %1909 = vmatprep.mubr.msk.bf16.mxu0 %vm373_vm1, %v2409_v18 }
 0x232   : > { %v820_v7 = vpack.c.bf16 %v807_v6, %v804_v4  ;;  %v1898_v9 = vpop.f32.mrb[23].mxu1 }
 0x234   : > { %1913 = vmatprep.subr.bf16.mxu0 %v820_v7 }
 0x235   : > { %1914 = vmatpush3.bf16.msra.mxu0 %v820_v7 }
 0x237   : > { %v812_v10 = vpop.f32.mrb[24].mxu1 }
 0x238   : > { %v1901_v11 = vpop.f32.mrb[25].mxu1  ;;  %1910 = vmatmul.mubr.msk.bf16.gmra.mrb[24].mxu0 %vm373_vm1, %v2418_v24 }
 0x239   : > { %v815_v12 = vpop.f32.mrb[26].mxu1  ;;  %1915 = vmatprep.mubr.msk.bf16.mxu0 %vm373_vm1, %v2394_v8  ;;  %v1883_v8 = vpop.f32.mrb[12].mxu0 }
 0x23a   : > { %v821_v13 = vpack.c.bf16 %v815_v12, %v812_v10  ;;  %v1902_v14 = vpop.f32.mrb[27].mxu1  ;;  %v697_v15 = vpop.f32.mrb[13].mxu0 }
 0x23b   : > { %v1884_v16 = vpop.f32.mrb[14].mxu0 }
 0x23c   : > { %1923 = vmatprep.subr.bf16.mxu1 %v821_v13  ;;  %v1712_v19 = vpack.c.bf16 %v1884_v16, %v1883_v8  ;;  %v700_v20 = vpop.f32.mrb[15].mxu0 }
 0x23d   : > { %1924 = vmatpush3.bf16.msra.mxu1 %v821_v13  ;;  %v1887_v21 = vpop.f32.mrb[16].mxu0 }
 0x23e   : > { %1792 = vst [vmem:[%s2453_s9 + $0x48] sm:$0xff] %v1712_v19  }
 0x240   : > { %1916 = vmatmul.mubr.msk.bf16.vlgmr.msra.gmra.mrb[28].mxu0 %vm373_vm1, %v2404_v17  ;;  %1926 = vmatmul.mubr.msk.bf16.vlgmr.msra.gmra.mrb[28].mxu1 %vm373_vm1, %v2404_v17  ;;  %v1707_v17 = vpack.c.bf16 %v700_v20, %v697_v15 }
 0x241   : > { %1919 = vmatprep.mubr.msk.bf16.mxu0 %vm373_vm1, %v2409_v18  ;;  %1929 = vmatprep.mubr.msk.bf16.mxu1 %vm373_vm1, %v2409_v18  ;;  %v713_v18 = vpop.f32.mrb[17].mxu0 }
 0x242   : > { %1791 = vst [vmem:[%s2453_s9 + $0x40] sm:$0xff] %v1707_v17   ;;  %v1888_v22 = vpop.f32.mrb[18].mxu0 }
 0x243   : > { %v1722_v23 = vpack.c.bf16 %v1888_v22, %v1887_v21  ;;  %v716_v25 = vpop.f32.mrb[19].mxu0 }
 0x244   : > { %v1717_v26 = vpack.c.bf16 %v716_v25, %v713_v18 }
 0x245   : > { %1794 = vst [vmem:[%s2453_s9 + $0x58] sm:$0xff] %v1722_v23  }
 0x246   : > { %1793 = vst [vmem:[%s2453_s9 + $0x50] sm:$0xff] %v1717_v26  }
 0x248   : > { %1920 = vmatmul.mubr.msk.bf16.gmra.mrb[32].mxu0 %vm373_vm1, %v2418_v24  ;;  %1930 = vmatmul.mubr.msk.bf16.gmra.mrb[32].mxu1 %vm373_vm1, %v2418_v24 }
 0x303   : > { %v1907_v24 = vpop.f32.mrb[20].mxu0 }
 0x304   : > { %v865_v27 = vpop.f32.mrb[21].mxu0 }
 0x305   : > { %v1908_v28 = vpop.f32.mrb[22].mxu0 }
 0x306   : > { %v1732_v29 = vpack.c.bf16 %v1908_v28, %v1907_v24  ;;  %v868_v30 = vpop.f32.mrb[23].mxu0 }
 0x307   : > { %v1727_v31 = vpack.c.bf16 %v868_v30, %v865_v27 }
 0x308   : > { %1796 = vst [vmem:[%s2453_s9 + $0x68] sm:$0xff] %v1732_v29  }
 0x309   : > { %1795 = vst [vmem:[%s2453_s9 + $0x60] sm:$0xff] %v1727_v31  }
 0x30b   : > { %v1911_v32 = vpop.f32.mrb[24].mxu0 }
 0x30c   : > { %v881_v33 = vpop.f32.mrb[25].mxu0 }
 0x30d   : > { %v1912_v34 = vpop.f32.mrb[26].mxu0 }
 0x30e   : > { %v1742_v35 = vpack.c.bf16 %v1912_v34, %v1911_v32  ;;  %v884_v36 = vpop.f32.mrb[27].mxu0 }
 0x30f   : > { %v1737_v37 = vpack.c.bf16 %v884_v36, %v881_v33 }
 0x310   : > { %1798 = vst [vmem:[%s2453_s9 + $0x78] sm:$0xff] %v1742_v35  }
 0x311   : > { %1797 = vst [vmem:[%s2453_s9 + $0x70] sm:$0xff] %v1737_v37  }
 0x313   : > { %v1917_v38 = vpop.f32.mrb[28].mxu0  ;;  %v1927_v39 = vpop.f32.mrb[28].mxu1 }
 0x314   : > { %v955_v40 = vpop.f32.mrb[29].mxu0  ;;  %v1045_v41 = vpop.f32.mrb[29].mxu1 }
 0x315   : > { %v1918_v42 = vpop.f32.mrb[30].mxu0  ;;  %v1928_v43 = vpop.f32.mrb[30].mxu1 }
 0x316   : > { %v1752_v44 = vpack.c.bf16 %v1918_v42, %v1917_v38  ;;  %v1772_v45 = vpack.c.bf16 %v1928_v43, %v1927_v39  ;;  %v958_v46 = vpop.f32.mrb[31].mxu0  ;;  %v1048_v47 = vpop.f32.mrb[31].mxu1 }
 0x317   : > { %v1747_v48 = vpack.c.bf16 %v958_v46, %v955_v40  ;;  %v1767_v49 = vpack.c.bf16 %v1048_v47, %v1045_v41 }
 0x318   : > { %1800 = vst [vmem:[%s2453_s9 + $0x88] sm:$0xff] %v1752_v44   ;;  %1804 = vst [vmem:[%s2453_s9 + $0xa8] sm:$0xff] %v1772_v45  }
 0x319   : > { %1799 = vst [vmem:[%s2453_s9 + $0x80] sm:$0xff] %v1747_v48   ;;  %1803 = vst [vmem:[%s2453_s9 + $0xa0] sm:$0xff] %v1767_v49  }
 0x31b   : > { %v1921_v50 = vpop.f32.mrb[32].mxu0  ;;  %v1931_v51 = vpop.f32.mrb[32].mxu1 }
 0x31c   : > { %v971_v52 = vpop.f32.mrb[33].mxu0  ;;  %v1061_v53 = vpop.f32.mrb[33].mxu1 }
 0x31d   : > { %v1922_v54 = vpop.f32.mrb[34].mxu0  ;;  %v1932_v55 = vpop.f32.mrb[34].mxu1 }
 0x31e   : > { %v1762_v56 = vpack.c.bf16 %v1922_v54, %v1921_v50  ;;  %v1782_v57 = vpack.c.bf16 %v1932_v55, %v1931_v51  ;;  %v974_v58 = vpop.f32.mrb[35].mxu0  ;;  %v1064_v59 = vpop.f32.mrb[35].mxu1 }
 0x31f   : > { %v1757_v60 = vpack.c.bf16 %v974_v58, %v971_v52  ;;  %v1777_v61 = vpack.c.bf16 %v1064_v59, %v1061_v53 }
 0x320   : > { %1802 = vst [vmem:[%s2453_s9 + $0x98] sm:$0xff] %v1762_v56   ;;  %1806 = vst [vmem:[%s2453_s9 + $0xb8] sm:$0xff] %v1782_v57  }
 0x321   : > { %1801 = vst [vmem:[%s2453_s9 + $0x90] sm:$0xff] %v1757_v60   ;;  %1805 = vst [vmem:[%s2453_s9 + $0xb0] sm:$0xff] %v1777_v61  }
 0x322   : > { %2091 = shalt.err (!%p2088_p11)
}
 0x323   : > { %s2092_s22 = scalar_lea.hbm %s2500_s18, 3072  ;;  %s2096_s13 = scalar_lea.hbm %s2559_s4, 6144 }
 0x324   : > { %p2093_p1 = scmp.ne.s32.totalorder %s2500_s18, %s2092_s22  ;;  %p2097_p4 = scmp.lt.u32.totalorder %s2500_s18, %s2559_s4 }
 0x325   : > { %p2098_p6 = scmp.lt.u32.totalorder %s2096_s13, %s2092_s22  ;;  %p2100_p0 = scmp.lt.u32.totalorder %s2092_s22, %s2500_s18 }
 0x326   : > { %p2094_p5 = pnand %p2093_p1, %p2572_p3 }
 0x327   : > { %p2099_p8 = por %p2098_p6, %p2097_p4 }
 0x328   : > { %p2095_p2 = pneg %p2094_p5 }
 0x329   : > { %p2101_p12 = por %p2100_p0, %p2099_p8 }
 0x32b   : > { %p2102_p13 = pnand %p2101_p12, %p2095_p2 }
 0x32d   : > { %2105 = shalt.err (!%p2102_p13)
}
 0x32e   : > { %s2173_s8 = smov 64   ;;  %s2174_s25 = smov 4  }
 0x32f   : > { %1944 = dma.vmem_to_hbm [thread:$0]  (%p2572_p3), %s2502_s5, 3072, %s2500_s18, %s1384_s12, %s2173_s8, %s2173_s8, %s2174_s25  }
 0x330 PF: > { %s1412_s10 = sand.u32 1, %s2144_s15   ;;  %p2573_p7 = scmp.ne.s32.totalorder %s2566_s30, 0 }
 0x331   : > { %p2574_p10 = scmp.ge.s32.totalorder %s2164_s20, 2  ;;  %s1413_s27 = scalar_lea.sflag [#allocation5], %s1412_s10 }
 0x333   : > { %p1954_p9 = pnand %p2574_p10, %p2573_p7 }
 0x335   : > { %2139 = dma.done.wait (!%p1954_p9), %s1413_s27, 3072  }
 0x336   : > { %2141 = vsyncadd (!%p1954_p9), %s1413_s27, 4294964224  ;;  %s23_s20 = sadd.s32 1, %s2164_s20   ;;  %s2575_s15 = smov %s2148_s16 }
 0x337   : > { %p20_p11 = scmp.ge.s32.totalorder %s23_s20, 4   ;;  %s2576_s16 = smov %s2152_s17 }
 0x338   : > { %s2577_s17 = smov %s2256_s29  ;;  %s2578_s18 = smov %s2160_s19 }
 0x339   : > { %s2579_s19 = smov %s2581_s23  ;;  %22 = sbr.rel (!%p20_p11) target bundleno = 8 (0x8), region = 110 }
 0x340   :  { %1418 = vsyncpa [#allocation4], 1 }
 0x341   :  { %1420 = vsyncpa [#allocation4 + $0x1], 1 }
 0x342   :  { %1421 = vsyncpa [#allocation7], 1 }
 0x343   :  { %1423 = vsyncpa [#allocation7 + $0x1], 1 }
 0x344   :  { %1424 = vsyncpa [#allocation5], 1 }
 0x345   :  { %1426 = vsyncpa [#allocation5 + $0x1], 1 }

</bundles_post_ra>
